<compile_context>
chip_gen: v7x
topology: tpu7x:2x2x1
jax: 0.10.0
libtpu: 0.0.40
codegen_flags: <defaults>
</compile_context>

<pallas_src>
import jax
import jax.numpy as jnp
from jax.experimental import pallas as pl
from jax.experimental.pallas import tpu as pltpu

ALPHA = 0.2          # LeakyReLU slope (SpGraphAttentionLayer default)
EPS = 9e-15          # matches torch.Tensor([9e-15])
MASK_VAL = -1e30     # score assigned to non-edges
M_INIT = -1e25       # running-max init: guarantees exp(MASK_VAL - m) == 0 exactly,
                     # so zero-edge rows (and padded rows) produce 0 output.


# --------------------------------------------------------------------------
# Kernel A: batched per-head projection + all 2H attention projections
# --------------------------------------------------------------------------
def _project_kernel(x_ref, w_ref, at_ref, ht_ref, va_ref):
    heads, f_out, rt = ht_ref.shape

    # One MXU pass for ALL heads.
    h_all = jnp.dot(x_ref[...], w_ref[...],
                    preferred_element_type=jnp.float32)              # (rt, H*F)

    # Per-head (rt, F) -> (F, rt) transposes (XLU), assembled in registers so
    # each output gets exactly ONE full-block lane-dense store (no masked vst).
    parts = [h_all[:, h * f_out:(h + 1) * f_out].T for h in range(heads)]
    ht_ref[...] = jnp.concatenate([p[None] for p in parts],
                                  axis=0).astype(ht_ref.dtype)       # (H, F, rt) bf16

    # All 2H attention projections in one MXU pass; output is already the
    # lane-dense (2H, rt) layout kernel B wants.
    h_flat_t = jnp.concatenate(parts, axis=0)                        # (H*F, rt)
    va = jnp.dot(at_ref[...], h_flat_t,
                 preferred_element_type=jnp.float32)                 # (2H, rt)
    va_ref[...] = jnp.concatenate([va[:heads][None], va[heads:][None]], axis=0)


# --------------------------------------------------------------------------
# Kernel B: online-softmax masked attention + aggregation, heads batched
# --------------------------------------------------------------------------
def _attention_kernel(adjt_ref, vsrc_ref, vdst_ref, ht_ref, out_ref,
                      m_ref, l_ref, acc_ref):
    j = pl.program_id(1)
    heads, f_out, rt = acc_ref.shape

    @pl.when(j == 0)
    def _init():
        m_ref[...] = jnp.full(m_ref.shape, M_INIT, m_ref.dtype)
        l_ref[...] = jnp.zeros(l_ref.shape, l_ref.dtype)
        acc_ref[...] = jnp.zeros(acc_ref.shape, acc_ref.dtype)

    # Scores in (head, n=col, m=row) orientation so the aggregation output and
    # the final store are lane-dense in the row dimension.
    vsrc_rows = vsrc_ref[0]                        # (H, rt)  rows m on lanes
    vdst_rows = vdst_ref[0]                        # (H, ct)  cols n on lanes
    vdst_t = vdst_rows.T                           # (ct, H)  one small XLU transpose
    vsrc3 = jnp.concatenate(
        [vsrc_rows[h:h + 1, :][None] for h in range(heads)], axis=0)   # (H, 1, rt)
    vdst3 = jnp.concatenate(
        [vdst_t[:, h:h + 1][None] for h in range(heads)], axis=0)      # (H, ct, 1)

    mask = (adjt_ref[...] != 0)[None, :, :]        # (1, ct, rt) from int8 adj^T tile
    s = vdst3 + vsrc3                              # (H, ct, rt)
    s = jnp.where(s >= 0, s, ALPHA * s)            # LeakyReLU
    s = jnp.where(mask, s, MASK_VAL)               # only existing edges count

    # Online softmax over column tiles (running per-row max / rowsum).
    m_old = m_ref[...]                                              # (H, 1, rt)
    m_new = jnp.maximum(m_old, jnp.max(s, axis=1, keepdims=True))   # (H, 1, rt)
    # No second mask select needed: masked scores are MASK_VAL and m_new >= M_INIT,
    # so exp underflows to exactly 0 for non-edges.
    e = jnp.exp(s - m_new)                                          # (H, ct, rt) f32
    alpha = jnp.exp(m_old - m_new)                                  # (H, 1, rt)

    l_ref[...] = alpha * l_ref[...] + jnp.sum(e, axis=1, keepdims=True)
    # bf16 x bf16 aggregation with f32 accumulation; MXU output lanes = row tile.
    p = jnp.einsum('hfn,hnm->hfm', ht_ref[...], e.astype(jnp.bfloat16),
                   preferred_element_type=jnp.float32)              # (H, F_out, rt)
    acc_ref[...] = alpha * acc_ref[...] + p
    m_ref[...] = m_new

    @pl.when(j == pl.num_programs(1) - 1)
    def _finalize():
        inv = pl.reciprocal(l_ref[...] + EPS, approx=True)          # (H, 1, rt)
        h_prime = acc_ref[...] * inv
        head_out = jnp.where(h_prime > 0, h_prime, jnp.exp(h_prime) - 1.0)   # ELU
        out_ref[...] = jnp.mean(head_out, axis=0)                   # (F_out, rt), lane-dense


# --------------------------------------------------------------------------
# Wrapper helpers
# --------------------------------------------------------------------------
def _physical_vmem_bytes():
    """Per-core VMEM reported by the hardware; conservative default otherwise."""
    try:
        info = pltpu.get_tpu_info()
        v = int(getattr(info, "vmem_capacity_bytes", 0))
        if v > 0:
            return v
    except Exception:
        pass
    return 64 * 1024 * 1024          # v7x per-core size (smallest of v5e/v6e/v7x)


def _choose_tiles(n_pad, heads, f_out, vmem_budget_bytes):
    """Largest (row_tile, col_tile) whose kernel-B working set fits the budget."""
    cands = [t for t in (512, 256, 128) if n_pad % t == 0] or [n_pad]
    for rt in cands:
        for ct in cands:
            live_scores = heads * rt * ct * 16            # s/e f32 temps + bf16 copy + mask
            io_blocks = 2 * (rt * ct                      # adj^T int8 (double-buffered)
                             + heads * f_out * ct * 2     # h^T bf16
                             + heads * (rt + ct) * 4)     # v_src / v_dst f32
            scratch = heads * rt * 8 * 4 * 2 + heads * f_out * rt * 4 + 2 * f_out * rt * 4
            if live_scores + io_blocks + scratch <= vmem_budget_bytes:
                return rt, ct
    return cands[-1], cands[-1]


# --------------------------------------------------------------------------
# Wrapper
# --------------------------------------------------------------------------
def multi_head_attention(x, adj, W, attn):
    """x: (N, F_in); adj: dense (N, N) mask (nonzero == edge, row = aggregation
    row); W: (H, F_in, F_out); attn: (H, 1, 2*F_out).  Returns (N, F_out) f32."""
    n, f_in = x.shape
    heads, _, f_out = W.shape

    # ---- pad N so the tiled / pipelined / megacore path is used for every shape
    n_pad = max(128, ((n + 127) // 128) * 128)

    # ---- per-generation VMEM budget & tile choice -------------------------
    phys_vmem = _physical_vmem_bytes()
    vmem_limit = min(int(phys_vmem * 0.8), 100 * 1024 * 1024)   # ~51 MiB v7x, ~100 MiB v5e/v6e
    rt, ct = _choose_tiles(n_pad, heads, f_out, int(vmem_limit * 0.6))

    # ---- parameter repacking (layout plumbing, outside the kernels) -------
    w_flat = jnp.transpose(W, (1, 0, 2)).reshape(f_in, heads * f_out).astype(jnp.float32)
    a_src = attn[:, 0, :f_out].astype(jnp.float32)               # (H, F)
    a_dst = attn[:, 0, f_out:].astype(jnp.float32)               # (H, F)
    eye = jnp.eye(heads, dtype=jnp.float32)
    a_src_t = (eye[:, :, None] * a_src[None, :, :]).reshape(heads, heads * f_out)
    a_dst_t = (eye[:, :, None] * a_dst[None, :, :]).reshape(heads, heads * f_out)
    a_proj_t = jnp.concatenate([a_src_t, a_dst_t], axis=0)       # (2H, H*F) block-diag^T

    x_pad = jnp.pad(x.astype(jnp.float32), ((0, n_pad - n), (0, 0)))
    # Adjacency travels transposed (column index on sublanes) and as int8.
    # TODO(synk): bit-pack adj (32 edges/word) + VPU decode to cut HBM traffic 8x on v5e.
    adj_t = jnp.pad((adj != 0).astype(jnp.int8).T,
                    ((0, n_pad - n), (0, n_pad - n)))

    # ---- kernel A: batched projections (row-tiled, megacore-parallel) -----
    ht, va = pl.pallas_call(
        _project_kernel,
        out_shape=(
            jax.ShapeDtypeStruct((heads, f_out, n_pad), jnp.bfloat16),   # h^T per head
            jax.ShapeDtypeStruct((2, heads, n_pad), jnp.float32),        # [v_src; v_dst]
        ),
        grid_spec=pltpu.PrefetchScalarGridSpec(
            num_scalar_prefetch=0,
            grid=(n_pad // rt,),
            in_specs=[
                pl.BlockSpec((rt, f_in), lambda i: (i, 0)),
                pl.BlockSpec((f_in, heads * f_out), lambda i: (0, 0)),
                pl.BlockSpec((2 * heads, heads * f_out), lambda i: (0, 0)),
            ],
            out_specs=[
                pl.BlockSpec((heads, f_out, rt), lambda i: (0, 0, i)),
                pl.BlockSpec((2, heads, rt), lambda i: (0, 0, i)),
            ],
        ),
        compiler_params=pltpu.CompilerParams(
            dimension_semantics=("parallel",),
            vmem_limit_bytes=vmem_limit,
        ),
        cost_estimate=pl.CostEstimate(
            flops=int(2 * n_pad * f_in * heads * f_out
                      + 2 * n_pad * heads * f_out * 2 * heads),
            transcendentals=0,
            bytes_accessed=int(4 * n_pad * f_in + 4 * f_in * heads * f_out
                               + 4 * 2 * heads * heads * f_out
                               + 2 * heads * f_out * n_pad + 4 * 2 * heads * n_pad),
        ),
    )(x_pad, w_flat, a_proj_t)

    # ---- kernel B: online-softmax attention + aggregation -----------------
    num_rt = n_pad // rt
    num_ct = n_pad // ct
    out_t = pl.pallas_call(
        _attention_kernel,
        out_shape=jax.ShapeDtypeStruct((f_out, n_pad), jnp.float32),
        grid_spec=pltpu.PrefetchScalarGridSpec(
            num_scalar_prefetch=0,
            grid=(num_rt, num_ct),
            in_specs=[
                pl.BlockSpec((ct, rt), lambda i, j: (j, i)),               # adj^T tile (int8)
                pl.BlockSpec((1, heads, rt), lambda i, j: (0, 0, i)),      # v_src rows
                pl.BlockSpec((1, heads, ct), lambda i, j: (1, 0, j)),      # v_dst cols
                pl.BlockSpec((heads, f_out, ct), lambda i, j: (0, 0, j)),  # h^T (bf16)
            ],
            out_specs=pl.BlockSpec((f_out, rt), lambda i, j: (0, i)),
            scratch_shapes=[
                pltpu.VMEM((heads, 1, rt), jnp.float32),        # running row max
                pltpu.VMEM((heads, 1, rt), jnp.float32),        # running rowsum
                pltpu.VMEM((heads, f_out, rt), jnp.float32),    # f32 accumulator
            ],
        ),
        compiler_params=pltpu.CompilerParams(
            dimension_semantics=("parallel", "arbitrary"),
            vmem_limit_bytes=vmem_limit,
        ),
        cost_estimate=pl.CostEstimate(
            flops=int(heads * (2 * n_pad * n_pad * f_out + 6 * n_pad * n_pad)),
            transcendentals=int(heads * n_pad * n_pad + heads * f_out * n_pad),
            bytes_accessed=int(n_pad * n_pad
                               + num_rt * 2 * heads * f_out * n_pad
                               + num_rt * 4 * heads * n_pad
                               + 4 * heads * n_pad + 4 * f_out * n_pad),
        ),
    )(adj_t, va, va, ht)

    return out_t[:, :n].T


# --------------------------------------------------------------------------
# Pure-JAX reference mirroring the PyTorch forward pass (f32, global edge max)
# --------------------------------------------------------------------------
def _reference(x, adj, W, attn):
    heads, _, f_out = W.shape
    mask = adj != 0
    outs = []
    for hidx in range(heads):
        h = x @ W[hidx]
        v_src = h @ attn[hidx][:, :f_out].T
        v_dst = h @ attn[hidx][:, f_out:].T
        s = v_src + v_dst.T
        s = jnp.where(s >= 0, s, ALPHA * s)
        s_max = jnp.max(jnp.where(mask, s, MASK_VAL))
        e = jnp.where(mask, jnp.exp(s - s_max), 0.0)
        rowsum = jnp.sum(e, axis=1, keepdims=True)
        h_prime = (e @ h) / (rowsum + EPS)
        outs.append(jnp.where(h_prime > 0, h_prime, jnp.exp(h_prime) - 1.0))
    return jnp.mean(jnp.stack(outs), axis=0)


if __name__ == "__main__":
    key = jax.random.PRNGKey(0)
    k_x, k_adj, k_w, k_a = jax.random.split(key, 4)

    N = 16          # nodes
    F_IN = 8        # in_features
    F_OUT = 8       # out_features
    HEADS = 4

    x = jax.random.normal(k_x, (N, F_IN), dtype=jnp.float32)

    # random sparse-ish adjacency with self-loops, as a dense mask
    adj_rand = jax.random.uniform(k_adj, (N, N)) < 0.25
    adj_dense = (adj_rand | jnp.eye(N, dtype=bool)).astype(jnp.float32)

    w_std = 1.414 * (2.0 / (F_IN + F_OUT)) ** 0.5
    a_std = 1.414 * (2.0 / (1 + 2 * F_OUT)) ** 0.5
    W = w_std * jax.random.normal(k_w, (HEADS, F_IN, F_OUT), dtype=jnp.float32)
    attn = a_std * jax.random.normal(k_a, (HEADS, 1, 2 * F_OUT), dtype=jnp.float32)

    out = multi_head_attention(x, adj_dense, W, attn)
    out = jax.block_until_ready(out)

    ref = _reference(x, adj_dense, W, attn)
    assert out.shape == (N, F_OUT)
    # Tolerance reflects the bf16 MXU aggregation (and approx reciprocal); the
    # f32 reference is the exact PyTorch math.
    assert jnp.allclose(out, ref, atol=5e-2, rtol=5e-2), "mismatch vs reference"

    print("KERNEL_OK")
</pallas_src>

<mosaic_0001>
module attributes {stable_mosaic.version = 11 : i64} {
  func.func @_project_kernel(%arg0: i32, %arg1: memref<128x8xf32, #tpu.memory_space<vmem>>, %arg2: memref<8x32xf32, #tpu.memory_space<vmem>>, %arg3: memref<8x32xf32, #tpu.memory_space<vmem>>, %arg4: memref<4x8x128xbf16, #tpu.memory_space<vmem>>, %arg5: memref<2x4x128xf32, #tpu.memory_space<vmem>>) attributes {dimension_semantics = [#tpu.dimension_semantics<parallel>], iteration_bounds = array<i64: 1>, scalar_prefetch = 0 : i64, scratch_operands = 0 : i64, tpu.core_type = #tpu.core_type<tc>, window_params = [{transform_indices = @transform_0, window_bounds = array<i64: 128, 8>}, {pipeline_mode = #tpu.pipeline_mode<synchronous>, transform_indices = @transform_1, window_bounds = array<i64: 8, 32>}, {pipeline_mode = #tpu.pipeline_mode<synchronous>, transform_indices = @transform_2, window_bounds = array<i64: 8, 32>}, {transform_indices = @transform_3, window_bounds = array<i64: 4, 8, 128>}, {transform_indices = @transform_4, window_bounds = array<i64: 2, 4, 128>}]} {
    %c0 = arith.constant 0 : index
    %c0_0 = arith.constant 0 : index
    %0 = vector.load %arg1[%c0, %c0_0] : memref<128x8xf32, #tpu.memory_space<vmem>>, vector<128x8xf32>
    %c0_1 = arith.constant 0 : index
    %c0_2 = arith.constant 0 : index
    %1 = vector.load %arg2[%c0_1, %c0_2] : memref<8x32xf32, #tpu.memory_space<vmem>>, vector<8x32xf32>
    %cst = arith.constant dense<0.000000e+00> : vector<128x32xf32>
    %2 = tpu.matmul %0, %1, %cst {dimension_numbers = #tpu.dot_dimension_numbers<[1], [0], [0], [1], [0, 0, 1, 1], [], []>} : vector<128x8xf32>, vector<8x32xf32>, vector<128x32xf32> -> vector<128x32xf32>
    %3 = vector.extract_strided_slice %2 {offsets = [0, 0], sizes = [128, 8], strides = [1, 1]} : vector<128x32xf32> to vector<128x8xf32>
    %4 = tpu.transpose %3, [1, 0] : vector<128x8xf32> -> vector<8x128xf32>
    %5 = vector.extract_strided_slice %2 {offsets = [0, 8], sizes = [128, 8], strides = [1, 1]} : vector<128x32xf32> to vector<128x8xf32>
    %6 = tpu.transpose %5, [1, 0] : vector<128x8xf32> -> vector<8x128xf32>
    %7 = vector.extract_strided_slice %2 {offsets = [0, 16], sizes = [128, 8], strides = [1, 1]} : vector<128x32xf32> to vector<128x8xf32>
    %8 = tpu.transpose %7, [1, 0] : vector<128x8xf32> -> vector<8x128xf32>
    %9 = vector.extract_strided_slice %2 {offsets = [0, 24], sizes = [128, 8], strides = [1, 1]} : vector<128x32xf32> to vector<128x8xf32>
    %10 = tpu.transpose %9, [1, 0] : vector<128x8xf32> -> vector<8x128xf32>
    %11 = vector.shape_cast %4 : vector<8x128xf32> to vector<1x8x128xf32>
    %12 = vector.shape_cast %6 : vector<8x128xf32> to vector<1x8x128xf32>
    %13 = vector.shape_cast %8 : vector<8x128xf32> to vector<1x8x128xf32>
    %14 = vector.shape_cast %10 : vector<8x128xf32> to vector<1x8x128xf32>
    %15 = tpu.concatenate %11, %12, %13, %14 in 0 : vector<1x8x128xf32>, vector<1x8x128xf32>, vector<1x8x128xf32>, vector<1x8x128xf32> -> vector<4x8x128xf32>
    %16 = arith.truncf %15 : vector<4x8x128xf32> to vector<4x8x128xbf16>
    %c0_3 = arith.constant 0 : index
    %c0_4 = arith.constant 0 : index
    %c0_5 = arith.constant 0 : index
    %17 = vector.load %arg4[%c0_3, %c0_4, %c0_5] : memref<4x8x128xbf16, #tpu.memory_space<vmem>>, vector<4x8x128xbf16>
    tpu.vector_store %arg4[%c0_3, %c0_4, %c0_5], %16 {strides = array<i32>} : memref<4x8x128xbf16, #tpu.memory_space<vmem>>, vector<4x8x128xbf16>,
    %18 = tpu.concatenate %4, %6, %8, %10 in 0 : vector<8x128xf32>, vector<8x128xf32>, vector<8x128xf32>, vector<8x128xf32> -> vector<32x128xf32>
    %c0_6 = arith.constant 0 : index
    %c0_7 = arith.constant 0 : index
    %19 = vector.load %arg3[%c0_6, %c0_7] : memref<8x32xf32, #tpu.memory_space<vmem>>, vector<8x32xf32>
    %cst_8 = arith.constant dense<0.000000e+00> : vector<8x128xf32>
    %20 = tpu.matmul %19, %18, %cst_8 {dimension_numbers = #tpu.dot_dimension_numbers<[1], [0], [0], [1], [0, 0, 1, 1], [], []>} : vector<8x32xf32>, vector<32x128xf32>, vector<8x128xf32> -> vector<8x128xf32>
    %21 = vector.extract_strided_slice %20 {offsets = [0, 0], sizes = [4, 128], strides = [1, 1]} : vector<8x128xf32> to vector<4x128xf32>
    %22 = vector.shape_cast %21 : vector<4x128xf32> to vector<1x4x128xf32>
    %23 = vector.extract_strided_slice %20 {offsets = [4, 0], sizes = [4, 128], strides = [1, 1]} : vector<8x128xf32> to vector<4x128xf32>
    %24 = vector.shape_cast %23 : vector<4x128xf32> to vector<1x4x128xf32>
    %25 = tpu.concatenate %22, %24 in 0 : vector<1x4x128xf32>, vector<1x4x128xf32> -> vector<2x4x128xf32>
    %c0_9 = arith.constant 0 : index
    %c0_10 = arith.constant 0 : index
    %c0_11 = arith.constant 0 : index
    %26 = vector.load %arg5[%c0_9, %c0_10, %c0_11] : memref<2x4x128xf32, #tpu.memory_space<vmem>>, vector<2x4x128xf32>
    tpu.vector_store %arg5[%c0_9, %c0_10, %c0_11], %25 {strides = array<i32>} : memref<2x4x128xf32, #tpu.memory_space<vmem>>, vector<2x4x128xf32>,
    return
  }
  func.func @transform_0(%arg0: i32) -> (i32, i32) {
    %c0_i32 = arith.constant 0 : i32
    %c0_i32_0 = arith.constant 0 : i32
    return %arg0, %c0_i32 : i32, i32
  }
  func.func @transform_1(%arg0: i32) -> (i32, i32) {
    %c0_i32 = arith.constant 0 : i32
    %c0_i32_0 = arith.constant 0 : i32
    %c0_i32_1 = arith.constant 0 : i32
    return %c0_i32, %c0_i32_0 : i32, i32
  }
  func.func @transform_2(%arg0: i32) -> (i32, i32) {
    %c0_i32 = arith.constant 0 : i32
    %c0_i32_0 = arith.constant 0 : i32
    %c0_i32_1 = arith.constant 0 : i32
    return %c0_i32, %c0_i32_0 : i32, i32
  }
  func.func @transform_3(%arg0: i32) -> (i32, i32, i32) {
    %c0_i32 = arith.constant 0 : i32
    %c0_i32_0 = arith.constant 0 : i32
    %c0_i32_1 = arith.constant 0 : i32
    return %c0_i32, %c0_i32_0, %arg0 : i32, i32, i32
  }
  func.func @transform_4(%arg0: i32) -> (i32, i32, i32) {
    %c0_i32 = arith.constant 0 : i32
    %c0_i32_0 = arith.constant 0 : i32
    %c0_i32_1 = arith.constant 0 : i32
    return %c0_i32, %c0_i32_0, %arg0 : i32, i32, i32
  }
}

</mosaic_0001>

<bundles_post_ra>
// kernel: tpu_custom_call.1
= control target key start
LH: loop header
LB: loop body
LE: loop exit
PB: predicated region body
PF: predicated region fallthrough
CT: control target
= control target key end

     0   :  { %10 = vsyncpa [#allocation3], 0  ;;  %vm35_vm0 = vcmask 64512   ;;  %s1227_s0 = inlined_call_operand.vmem [shape: f32[128,8], index: 0, kind: input, shape index: {}]   ;;  %s1228_s1 = inlined_call_operand.vmem [shape: f32[8,32], index: 1, kind: input, shape index: {}]   ;;  %s1229_s2 = inlined_call_operand.vmem [shape: f32[8,32], index: 2, kind: input, shape index: {}]   ;;  %s1230_s3 = inlined_call_operand.hbm [shape: bf16[4,8,128], index: 3, kind: output, shape index: {0}]   ;;  %s1231_s4 = inlined_call_operand.hbm [shape: f32[2,4,128], index: 4, kind: output, shape index: {1}]  }
   0x1   :  { %v34_v0 = vld [vmem:[%s1228_s1] sm:$0xff]  ;;  %v19_v2 = vld [vmem:[%s1227_s0 + $0x8] sm:$0xff]  ;;  %v28_v3 = vld [vmem:[%s1227_s0 + $0x50] sm:$0xff] }
   0x2   :  { %v18_v1 = vld [vmem:[%s1227_s0] sm:$0xff]  ;;  %687 = vmatprep.subr.mxu0 %v34_v0  ;;  %v20_v4 = vld [vmem:[%s1227_s0 + $0x10] sm:$0xff]  ;;  %730 = vmatprep.subr.mxu1 %v34_v0  ;;  %v29_v5 = vld [vmem:[%s1227_s0 + $0x58] sm:$0xff] }
   0x3   :  { %689 = vmatprep.mubr.msk.f32.mxu0 %vm35_vm0, %v18_v1  ;;  %688 = vmatpush3.msra.mxu0 %v34_v0  ;;  %v30_v6 = vld [vmem:[%s1227_s0 + $0x60] sm:$0xff]  ;;  %v21_v7 = vld [vmem:[%s1227_s0 + $0x18] sm:$0xff] }
   0x4   :  { %690 = vmatmul.mubr.msk.f32.vlgmr.msra.gmra.mrb[0].mxu0 %vm35_vm0, %v19_v2  ;;  %731 = vmatpush3.msra.mxu1 %v34_v0  ;;  %v22_v8 = vld [vmem:[%s1227_s0 + $0x20] sm:$0xff] }
   0x5   :  { %704 = vmatprep.mubr.msk.f32.mxu1 %vm35_vm0, %v28_v3  ;;  %692 = vmatprep.mubr.msk.f32.mxu0 %vm35_vm0, %v20_v4 }
   0x6   :  { %705 = vmatmul.mubr.msk.f32.vlgmr.msra.gmra.mrb[0].mxu1 %vm35_vm0, %v29_v5 }
   0x7   :  { %11 = vsyncpa [#allocation5], 0  ;;  %707 = vmatprep.mubr.msk.f32.mxu1 %vm35_vm0, %v30_v6  ;;  %v31_v9 = vld [vmem:[%s1227_s0 + $0x68] sm:$0xff]  ;;  %v32_v10 = vld [vmem:[%s1227_s0 + $0x70] sm:$0xff]  ;;  %s984_s22 = smov 112   ;;  %s985_s23 = smov 120  }
   0x8   :  { %693 = vmatmul.mubr.msk.f32.gmra.mrb[2].mxu0 %vm35_vm0, %v21_v7  ;;  %v23_v11 = vld [vmem:[%s1227_s0 + $0x28] sm:$0xff]  ;;  %v24_v12 = vld [vmem:[%s1227_s0 + $0x30] sm:$0xff]  ;;  %v33_v13 = vld [vmem:[%s1227_s0 + $0x78] sm:$0xff]  ;;  %vm988_vm1 = vmmov 0   ;;  %vm526_vm2 = vcmask 261120   ;;  %s990_s25 = smov [#allocation2]  }
   0x9   :  { %695 = vmatprep.mubr.msk.f32.mxu0 %vm35_vm0, %v22_v8  ;;  %v25_v14 = vld [vmem:[%s1227_s0 + $0x38] sm:$0xff]  ;;  %v26_v15 = vld [vmem:[%s1227_s0 + $0x40] sm:$0xff]  ;;  %v27_v16 = vld [vmem:[%s1227_s0 + $0x48] sm:$0xff]  ;;  %s986_s0 = smov 104   ;;  %v987_v8 = vmov 0.0|0.0   ;;  %s610_s26 = sshll.u32 %s990_s25, 4  ;;  %s611_s26 = int_to_ptr.vmem [resolvable:$true] %s610_s26 }
   0xa   :  { %708 = vmatmul.mubr.msk.f32.gmra.mrb[2].mxu1 %vm35_vm0, %v31_v9  ;;  %724 = vmatprep.subr.bf16.mxu1 %v987_v8  ;;  %s936_s27 = scalar_lea.vmem %s611_s26, 256  ;;  %p941_p1 = scmp.lt.s32.totalorder %s611_s26, %s611_s26 }
   0xb   :  { %710 = vmatprep.mubr.msk.f32.mxu1 %vm35_vm0, %v32_v10  ;;  %p937_p0 = scmp.ne.s32.totalorder %s611_s26, %s936_s27  ;;  %p942_p2 = scmp.lt.s32.totalorder %s936_s27, %s936_s27 }
   0xc   :  { %696 = vmatmul.mubr.msk.f32.gmra.mrb[4].mxu0 %vm35_vm0, %v23_v11 }
   0xd   :  { %698 = vmatprep.mubr.msk.f32.mxu0 %vm35_vm0, %v24_v12  ;;  %p943_p3 = por %p942_p2, %p941_p1 }
   0xe   :  { %711 = vmatmul.mubr.msk.f32.gmra.mrb[4].mxu1 %vm35_vm0, %v33_v13 }
   0xf   :  { %p944_p4 = pnand %p943_p3, %p937_p0 }
  0x10   :  { %699 = vmatmul.mubr.msk.f32.gmra.mrb[6].mxu0 %vm35_vm0, %v25_v14 }
  0x11   :  { %701 = vmatprep.mubr.msk.f32.mxu0 %vm35_vm0, %v26_v15  ;;  %v989_v15 = vmov 0.0  }
  0x12   :  { %721 = vmatprep.mubr.msk.f32.mxu1 %vm988_vm1, %v989_v15 }
  0x14   :  { %702 = vmatmul.mubr.msk.f32.gmra.mrb[8].mxu0 %vm35_vm0, %v27_v16 }
  0xd7   :  { %v691_v17 = vpop.f32.mrb[0].mxu0 }
  0xd8   :  { %v150_v18 = vpop.f32.mrb[1].mxu0 }
  0xd9   :  { %v1086_v19 = vpop.f32.mrb[0].mxu1  ;;  %v747_v20 = vpack.i.bf16 %v691_v17, %v150_v18 }
  0xda   :  { %v1088_v21 = vpop.f32.mrb[1].mxu1 }
  0xdb   :  { %748 = vrot.lane.b32.xlu1 %v747_v20, %s984_s22  ;;  %743 = vrot.lane.b32.xlu0 %v747_v20, %s985_s23  ;;  %v767_v22 = vpack.i.bf16 %v1086_v19, %v1088_v21  ;;  %v1094_v23 = vpop.f32.mrb[2].mxu0 }
  0xdc   :  { %v160_v24 = vpop.f32.mrb[3].mxu0 }
  0xdd   :  { %v772_v25 = vpack.i.bf16 %v1094_v23, %v160_v24  ;;  %v1097_v26 = vpop.f32.mrb[2].mxu1 }
  0xde   :  { %v1099_v27 = vpop.f32.mrb[3].mxu1 }
  0xdf   :  { %753 = vrot.lane.b32.xlu1 %v747_v20, %s986_s0  ;;  %768 = vrot.lane.b32.xlu0 %v767_v22, %s986_s0  ;;  %v787_v28 = vpack.i.bf16 %v1097_v26, %v1099_v27  ;;  %v1105_v29 = vpop.f32.mrb[4].mxu0 }
  0xe0   :  { %v1107_v30 = vpop.f32.mrb[5].mxu0 }
  0xe1   :  { %v1109_v31 = vpop.f32.mrb[4].mxu1  ;;  %v812_v32 = vpack.i.bf16 %v1105_v29, %v1107_v30 }
  0xe2   :  { %v1113_v33 = vpop.f32.mrb[5].mxu1 }
  0xe3   :  { %758 = vrot.lane.b32.xlu1 %v767_v22, %s985_s23  ;;  %773 = vrot.lane.b32.xlu0 %v772_v25, %s985_s23  ;;  %v817_v34 = vpack.i.bf16 %v1109_v31, %v1113_v33  ;;  %v1119_v35 = vpop.f32.mrb[6].mxu0 }
  0xe4   :  { %v1121_v36 = vpop.f32.mrb[7].mxu0 }
  0xe5   :  { %v842_v37 = vpack.i.bf16 %v1119_v35, %v1121_v36 }
  0xe7   :  { %763 = vrot.lane.b32.xlu1 %v767_v22, %s984_s22  ;;  %783 = vrot.lane.b32.xlu0 %v772_v25, %s986_s0  ;;  %v1127_v38 = vpop.f32.mrb[8].mxu0 }
  0xe8   :  { %v1129_v39 = vpop.f32.mrb[9].mxu0 }
  0xe9   :  { %v857_v40 = vpack.i.bf16 %v1127_v38, %v1129_v39 }
  0xeb   :  { %778 = vrot.lane.b32.xlu1 %v772_v25, %s984_s22  ;;  %788 = vrot.lane.b32.xlu0 %v787_v28, %s985_s23 }
  0xef   :  { %798 = vrot.lane.b32.xlu1 %v787_v28, %s986_s0  ;;  %793 = vrot.lane.b32.xlu0 %v787_v28, %s984_s22 }
  0xf3   :  { %813 = vrot.lane.b32.xlu1 %v812_v32, %s986_s0  ;;  %803 = vrot.lane.b32.xlu0 %v812_v32, %s985_s23 }
  0xf7   :  { %818 = vrot.lane.b32.xlu1 %v817_v34, %s985_s23  ;;  %808 = vrot.lane.b32.xlu0 %v812_v32, %s984_s22 }
  0xfb   :  { %828 = vrot.lane.b32.xlu1 %v817_v34, %s986_s0  ;;  %823 = vrot.lane.b32.xlu0 %v817_v34, %s984_s22 }
  0xff   :  { %843 = vrot.lane.b32.xlu0 %v842_v37, %s986_s0  ;;  %833 = vrot.lane.b32.xlu1 %v842_v37, %s985_s23 }
 0x103   :  { %838 = vrot.lane.b32.xlu1 %v842_v37, %s984_s22  ;;  %848 = vrot.lane.b32.xlu0 %v857_v40, %s985_s23 }
 0x107   :  { %858 = vrot.lane.b32.xlu1 %v857_v40, %s986_s0  ;;  %853 = vrot.lane.b32.xlu0 %v857_v40, %s984_s22 }
 0x14d   :  { %v749_v41 = vpop.permute.xlu1 %748  ;;  %v744_v42 = vpop.permute.xlu0 %743 }
 0x14e   :  { %v745_v43 = vunpack.i.l.bf16 %v744_v42  ;;  %v746_v44 = vunpack.i.h.bf16 %v744_v42  ;;  %v750_v48 = vunpack.i.l.bf16 %v749_v41  ;;  %v751_v55 = vunpack.i.h.bf16 %v749_v41 }
 0x150   :  { %v862_v45 = vpack.i.bf16 %v745_v43, %v150_v18  ;;  %v864_v50 = vpack.i.bf16 %v746_v44, %v691_v17 }
 0x151   :  { %v754_v46 = vpop.permute.xlu1 %753  ;;  %v1149_v47 = vpop.permute.xlu0 %768 }
 0x152   :  { %v755_v49 = vunpack.i.l.bf16 %v754_v46  ;;  %863 = vxpose.xlu0.b32.start [1/16] (narrow) %v862_v45, 8  ;;  %v756_v51 = vunpack.i.h.bf16 %v754_v46 }
 0x154   :  { %v899_v52 = vpack.i.bf16 %v755_v49, %v750_v48  ;;  %v901_v57 = vpack.i.bf16 %v756_v51, %v751_v55 }
 0x155   :  { %v1151_v53 = vpop.permute.xlu1 %758  ;;  %v774_v54 = vpop.permute.xlu0 %773 }
 0x156   :  { %v775_v56 = vunpack.i.l.bf16 %v774_v54  ;;  %900 = vxpose.xlu1.b32.start [1/16] (narrow) %v899_v52, 8  ;;  %865 = vxpose.xlu0.b32.cont [2/16] (narrow) %v864_v50, 8  ;;  %v776_v58 = vunpack.i.h.bf16 %v774_v54 }
 0x158   :  { %v866_v59 = vpack.i.bf16 %v775_v56, %v160_v24  ;;  %v868_v62 = vpack.i.bf16 %v776_v58, %v1094_v23 }
 0x159   :  { %v1153_v60 = vpop.permute.xlu1 %763  ;;  %v784_v61 = vpop.permute.xlu0 %783 }
 0x15a   :  { %902 = vxpose.xlu1.b32.cont [2/16] (narrow) %v901_v57, 8  ;;  %867 = vxpose.xlu0.b32.cont [3/16] (narrow) %v866_v59, 8  ;;  %v785_v1 = vunpack.i.l.bf16 %v784_v61  ;;  %v786_v7 = vunpack.i.h.bf16 %v784_v61  ;;  %v760_v59 = vunpack.i.l.bf16 %v1151_v53 }
 0x15d   :  { %v779_v63 = vpop.permute.xlu1 %778  ;;  %v1156_v0 = vpop.permute.xlu0 %788 }
 0x15e   :  { %v780_v2 = vunpack.i.l.bf16 %v779_v63  ;;  %869 = vxpose.xlu0.b32.cont [4/16] (narrow) %v868_v62, 8  ;;  %v781_v3 = vunpack.i.h.bf16 %v779_v63 }
 0x160   :  { %v903_v4 = vpack.i.bf16 %v785_v1, %v780_v2  ;;  %v905_v9 = vpack.i.bf16 %v786_v7, %v781_v3  ;;  %v761_v1 = vunpack.i.h.bf16 %v1151_v53  ;;  %v882_v2 = vpack.i.bf16 %v760_v59, %v1088_v21 }
 0x161   :  { %v1158_v5 = vpop.permute.xlu1 %798  ;;  %v1160_v6 = vpop.permute.xlu0 %793  ;;  %v765_v3 = vunpack.i.l.bf16 %v1153_v60  ;;  %v766_v7 = vunpack.i.h.bf16 %v1153_v60  ;;  %v791_v21 = vunpack.i.h.bf16 %v1156_v0 }
 0x162   :  { %904 = vxpose.xlu1.b32.cont [3/16] (narrow) %v903_v4, 8  ;;  %v770_v4 = vunpack.i.l.bf16 %v1149_v47  ;;  %v796_v60 = vunpack.i.h.bf16 %v1160_v6 }
 0x163   :  { %v888_v15 = vpack.i.bf16 %v791_v21, %v1097_v26 }
 0x165   :  { %v814_v10 = vpop.permute.xlu1 %813  ;;  %v804_v11 = vpop.permute.xlu0 %803 }
 0x166   :  { %v805_v12 = vunpack.i.l.bf16 %v804_v11  ;;  %906 = vxpose.xlu1.b32.cont [4/16] (narrow) %v905_v9, 8  ;;  %v806_v13 = vunpack.i.h.bf16 %v804_v11  ;;  %v815_v18 = vunpack.i.l.bf16 %v814_v10  ;;  %v816_v32 = vunpack.i.h.bf16 %v814_v10 }
 0x167   :  { %v919_v9 = vpack.i.bf16 %v770_v4, %v765_v3  ;;  %v790_v10 = vunpack.i.l.bf16 %v1156_v0  ;;  %v771_v11 = vunpack.i.h.bf16 %v1149_v47 }
 0x168   :  { %v870_v14 = vpack.i.bf16 %v805_v12, %v1107_v30  ;;  %v872_v22 = vpack.i.bf16 %v806_v13, %v1105_v29  ;;  %v800_v13 = vunpack.i.l.bf16 %v1158_v5 }
 0x169   :  { %v1164_v16 = vpop.permute.xlu1 %818  ;;  %v809_v17 = vpop.permute.xlu0 %808  ;;  %v921_v53 = vpack.i.bf16 %v771_v11, %v766_v7  ;;  %v886_v12 = vpack.i.bf16 %v790_v10, %v1099_v27 }
 0x16a   :  { %v810_v20 = vunpack.i.l.bf16 %v809_v17  ;;  %871 = vxpose.xlu0.b32.cont [5/16] (narrow) %v870_v14, 8  ;;  %v811_v23 = vunpack.i.h.bf16 %v809_v17  ;;  %v795_v14 = vunpack.i.l.bf16 %v1160_v6  ;;  %v820_v17 = vunpack.i.l.bf16 %v1164_v16 }
 0x16b   :  { %v821_v27 = vunpack.i.h.bf16 %v1164_v16 }
 0x16c   :  { %v907_v24 = vpack.i.bf16 %v815_v18, %v810_v20  ;;  %v909_v30 = vpack.i.bf16 %v816_v32, %v811_v23  ;;  %v923_v47 = vpack.i.bf16 %v800_v13, %v795_v14  ;;  %v890_v18 = vpack.i.bf16 %v820_v17, %v1113_v33 }
 0x16d   :  { %v1167_v25 = vpop.permute.xlu1 %828  ;;  %v1169_v28 = vpop.permute.xlu0 %823 }
 0x16e   :  { %908 = vxpose.xlu1.b32.cont [5/16] (narrow) %v907_v24, 8  ;;  %873 = vxpose.xlu0.b32.cont [6/16] (narrow) %v872_v22, 8  ;;  %v830_v20 = vunpack.i.l.bf16 %v1167_v25  ;;  %v825_v22 = vunpack.i.l.bf16 %v1169_v28  ;;  %v831_v26 = vunpack.i.h.bf16 %v1167_v25  ;;  %v826_v6 = vunpack.i.h.bf16 %v1169_v28  ;;  %v525_v25 = vld [vmem:[%s1229_s2] sm:$0xff] }
 0x170   :  { %v927_v23 = vpack.i.bf16 %v830_v20, %v825_v22  ;;  %v929_v24 = vpack.i.bf16 %v831_v26, %v826_v6 }
 0x171   :  { %v844_v34 = vpop.permute.xlu0 %843  ;;  %v834_v37 = vpop.permute.xlu1 %833 }
 0x172   :  { %v835_v40 = vunpack.i.l.bf16 %v834_v37  ;;  %910 = vxpose.xlu1.b32.cont [6/16] (narrow) %v909_v30, 8  ;;  %v836_v41 = vunpack.i.h.bf16 %v834_v37  ;;  %v845_v29 = vunpack.i.l.bf16 %v844_v34  ;;  %v846_v54 = vunpack.i.h.bf16 %v844_v34 }
 0x174   :  { %v874_v42 = vpack.i.bf16 %v835_v40, %v1121_v36  ;;  %v876_v46 = vpack.i.bf16 %v836_v41, %v1119_v35 }
 0x175   :  { %v839_v43 = vpop.permute.xlu1 %838  ;;  %v849_v44 = vpop.permute.xlu0 %848 }
 0x176   :  { %v840_v45 = vunpack.i.l.bf16 %v839_v43  ;;  %875 = vxpose.xlu0.b32.cont [7/16] (narrow) %v874_v42, 8  ;;  %v841_v48 = vunpack.i.h.bf16 %v839_v43  ;;  %v850_v50 = vunpack.i.l.bf16 %v849_v44  ;;  %v851_v55 = vunpack.i.h.bf16 %v849_v44 }
 0x178   :  { %v911_v49 = vpack.i.bf16 %v845_v29, %v840_v45  ;;  %v913_v56 = vpack.i.bf16 %v846_v54, %v841_v48  ;;  %v878_v57 = vpack.i.bf16 %v850_v50, %v1129_v39  ;;  %v880_v35 = vpack.i.bf16 %v851_v55, %v1127_v38 }
 0x179   :  { %v859_v51 = vpop.permute.xlu1 %858  ;;  %v854_v52 = vpop.permute.xlu0 %853  ;;  %v884_v38 = vpack.i.bf16 %v761_v1, %v1086_v19  ;;  %v801_v19 = vunpack.i.h.bf16 %v1158_v5  ;;  %v892_v5 = vpack.i.bf16 %v821_v27, %v1109_v31 }
 0x17a   :  { %912 = vxpose.xlu1.b32.cont [7/16] (narrow) %v911_v49, 8  ;;  %877 = vxpose.xlu0.b32.cont [8/16] (narrow) %v876_v46, 8  ;;  %v860_v36 = vunpack.i.l.bf16 %v859_v51  ;;  %v855_v58 = vunpack.i.l.bf16 %v854_v52  ;;  %v861_v61 = vunpack.i.h.bf16 %v859_v51  ;;  %v856_v62 = vunpack.i.h.bf16 %v854_v52 }
 0x17b   :  { %v925_v0 = vpack.i.bf16 %v801_v19, %v796_v60 }
 0x17c   :  { %v915_v63 = vpack.i.bf16 %v860_v36, %v855_v58  ;;  %v917_v39 = vpack.i.bf16 %v861_v61, %v856_v62 }
 0x17e   :  { %914 = vxpose.xlu1.b32.cont [8/16] (narrow) %v913_v56, 8  ;;  %879 = vxpose.xlu0.b32.cont [9/16] (narrow) %v878_v57, 8 }
 0x182   :  { %916 = vxpose.xlu1.b32.cont [9/16] (narrow) %v915_v63, 8  ;;  %881 = vxpose.xlu0.b32.cont [10/16] (narrow) %v880_v35, 8 }
 0x186   :  { %918 = vxpose.xlu1.b32.cont [10/16] (narrow) %v917_v39, 8  ;;  %883 = vxpose.xlu0.b32.cont [11/16] (narrow) %v882_v2, 8 }
 0x18a   :  { %920 = vxpose.xlu1.b32.cont [11/16] (narrow) %v919_v9, 8  ;;  %885 = vxpose.xlu0.b32.cont [12/16] (narrow) %v884_v38, 8 }
 0x18e   :  { %922 = vxpose.xlu1.b32.cont [12/16] (narrow) %v921_v53, 8  ;;  %887 = vxpose.xlu0.b32.cont [13/16] (narrow) %v886_v12, 8 }
 0x192   :  { %924 = vxpose.xlu1.b32.cont [13/16] (narrow) %v923_v47, 8  ;;  %889 = vxpose.xlu0.b32.cont [14/16] (narrow) %v888_v15, 8 }
 0x196   :  { %926 = vxpose.xlu1.b32.cont [14/16] (narrow) %v925_v0, 8  ;;  %891 = vxpose.xlu0.b32.cont [15/16] (narrow) %v890_v18, 8 }
 0x19a   :  { %928 = vxpose.xlu1.b32.cont [15/16] (narrow) %v927_v23, 8  ;;  %893 = vxpose.xlu0.b32.end [16/16] (narrow) %v892_v5, 8 }
 0x19e   :  { %930 = vxpose.xlu1.b32.end [16/16] (narrow) %v929_v24, 8 }
 0x1de   :  { %v894_v16 = vpop.trf.xlu0 }
 0x1df   :  { %v898_v32 = vunpack.i.h.bf16 %v894_v16  ;;  %v895_v33 = vunpack.i.l.bf16 %v894_v16 }
 0x1e1   :  { %v657_v30 = vpack.c.bf16 %v898_v32, %v895_v33 }
 0x1e2   :  { %v931_v34 = vpop.trf.xlu1 }
 0x1e3   :  { %658 = vst [vmem:[#allocation2] sm:$0xff] %v657_v30   ;;  %726 = vmatpush3.bf16.msra.mxu1 %v657_v30  ;;  %v935_v37 = vunpack.i.h.bf16 %v931_v34  ;;  %v932_v40 = vunpack.i.l.bf16 %v931_v34 }
 0x1e4   :  { %727 = vmatprep.subr.bf16.mxu1 %v987_v8 }
 0x1e5   :  { %v662_v31 = vpack.c.bf16 %v935_v37, %v932_v40 }
 0x1e7   :  { %664 = vst [vmem:[#allocation2 + $0x8] sm:$0xff] %v662_v31   ;;  %729 = vmatpush3.bf16.msra.mxu1 %v662_v31 }
 0x1ea   :  { %722 = vmatmul.mubr.msk.f32.vlgmr.msra.gmra.mrb[6].mxu1 %vm526_vm2, %v525_v25 }
 0x1eb   :  { %947 = shalt.err (!%p944_p4)
}
 0x1ec   :  { %s948_s30 = scalar_lea.hbm %s1230_s3, 256 }
 0x1ed   :  { %p949_p5 = scmp.ne.s32.totalorder %s1230_s3, %s948_s30  ;;  %p952_p6 = scmp.lt.u32.totalorder %s948_s30, %s1230_s3 }
 0x1ef   :  { %p954_p7 = pnand %p952_p6, %p949_p5 }
 0x1f1   :  { %957 = shalt.err (!%p954_p7)
}
 0x1f2   :  { %s991_s8 = smov 64   ;;  %s992_s9 = smov 4  }
 0x1f3   :  { %616 = dma.vmem_to_hbm [thread:$0]  %s611_s26, 256, %s1230_s3, [#allocation3], %s991_s8, %s991_s8, %s992_s9  }
 0x1f4   :  { %s993_s12 = smov [#allocation4]  }
 0x1f5   :  { %s622_s13 = sshll.u32 %s993_s12, 4  ;;  %s623_s13 = int_to_ptr.vmem [resolvable:$true] %s622_s13 }
 0x1f6   :  { %s958_s14 = scalar_lea.vmem %s623_s13, 128  ;;  %p963_p9 = scmp.lt.s32.totalorder %s623_s13, %s623_s13 }
 0x1f7   :  { %p959_p8 = scmp.ne.s32.totalorder %s623_s13, %s958_s14  ;;  %p964_p10 = scmp.lt.s32.totalorder %s958_s14, %s958_s14 }
 0x1f9   :  { %p965_p11 = por %p964_p10, %p963_p9 }
 0x1fb   :  { %p966_p12 = pnand %p965_p11, %p959_p8 }
 0x2bd   :  { %v596_v8 = vpop.f32.mrb[6].mxu1 }
 0x2be   :  { %v601_v28 = vrot.slane %v596_v8, 4  ;;  %603 = vst [vmem:[#allocation4] sm:$0xf] %v596_v8  ;;  %v723_v41 = vpop.f32.mrb[7].mxu1 }
 0x2c0   :  { %604 = vst [vmem:[#allocation4 + $0x4] sm:$0xf] %v601_v28 }
 0x2c1   :  { %969 = shalt.err (!%p966_p12)
}
 0x2c2   :  { %s970_s17 = scalar_lea.hbm %s1231_s4, 128 }
 0x2c3   :  { %p971_p13 = scmp.ne.s32.totalorder %s1231_s4, %s970_s17  ;;  %p974_p0 = scmp.lt.u32.totalorder %s970_s17, %s1231_s4 }
 0x2c5   :  { %p976_p1 = pnand %p974_p0, %p971_p13 }
 0x2c7   :  { %979 = shalt.err (!%p976_p1)
}
 0x2c8   :  { %628 = dma.vmem_to_hbm [thread:$0]  %s623_s13, 128, %s1231_s4, [#allocation5], %s991_s8, %s991_s8, %s992_s9  }
 0x2c9   :  { %980 = dma.done.wait [#allocation3], 256  }
 0x2ca   :  { %981 = vsyncadd [#allocation3], 4294967040 }
 0x2cb   :  { %982 = dma.done.wait [#allocation5], 128  }
 0x2cc   :  { %983 = vsyncadd [#allocation5], 4294967168 }
 0x2cd   :  { %635 = vsyncpa [#allocation3], 1 }
 0x2ce   :  { %636 = vsyncpa [#allocation5], 1 }

</bundles_post_ra>
